<compile_context>
chip_gen: v6e
topology: v6e:2x2x1
jax: 0.10.0
libtpu: 0.0.40
codegen_flags: <defaults>
</compile_context>

<pallas_src>
import functools

import jax
import jax.numpy as jnp
from jax import lax
from jax.experimental import pallas as pl
from jax.experimental.pallas import tpu as pltpu

_BN_EPS = 1e-5
_LANES = 128
_MAX_TILE_M = 1024
_VMEM_LIMIT = 48 * 1024 * 1024     # stay under v7x's 64 MiB/TC physical VMEM


def _round_up(x, m):
    return ((x + m - 1) // m) * m


def _pick_tile_m(n_rows, k_cols, wp):
    """Largest 128-multiple row tile whose pipelined blocks fit the budget."""
    # bf16 patch block + bf16 output block, double-buffered, plus the f32
    # matmul accumulator temporary.
    per_row = 2 * (k_cols * 2) + 2 * (wp * 2) + wp * 4
    budget = 24 * 1024 * 1024
    t = (budget // max(per_row, 1)) // _LANES * _LANES
    t = max(_LANES, min(_MAX_TILE_M, t))
    return int(min(t, _round_up(n_rows, _LANES)))


def _complex_conv_kernel(p_ref, w_ref, b_ref, y_ref, sum_ref, ssq_ref):
    """One row-tile of the complex conv as a single im2col matmul.

    p_ref  : (tile_m, 2K) bf16   [patches(real) | patches(imag)]
    w_ref  : (2K, Wp)     bf16   [[Wr, Wi], [-Wi, Wr]]  (channel-padded)
    b_ref  : (1, Wp)      f32    [b_real - b_imag | b_real + b_imag]
    y_ref  : (tile_m, Wp) bf16   [out_real | out_imag]
    sum_ref: (1, Wp)      f32    per-channel sum    (resident over row tiles)
    ssq_ref: (1, Wp)      f32    per-channel sum-sq (resident over row tiles)
    """
    acc = jnp.dot(p_ref[...], w_ref[...], preferred_element_type=jnp.float32)
    y = acc + b_ref[...]                      # (tile_m, Wp) f32
    y_ref[...] = y.astype(y_ref.dtype)

    @pl.when(pl.program_id(1) == 0)
    def _():
        sum_ref[...] = jnp.zeros_like(sum_ref)
        ssq_ref[...] = jnp.zeros_like(ssq_ref)

    # Stats in f32 from the pre-cast result.  Padded rows contribute exactly
    # the bias row (zero patches); that is corrected in the XLA finalize.
    sum_ref[...] += jnp.sum(y, axis=0, keepdims=True)
    ssq_ref[...] += jnp.sum(y * y, axis=0, keepdims=True)


def _bn_prelu_kernel(y_ref, scale_ref, shift_ref, alpha_ref, o_ref):
    """Fused BatchNorm affine + PReLU; f32 math, bf16 in/out."""
    z = y_ref[...].astype(jnp.float32) * scale_ref[...] + shift_ref[...]
    a = alpha_ref[0]                           # shared PReLU alpha from SMEM
    o_ref[...] = jnp.where(z >= 0.0, z, a * z).astype(o_ref.dtype)


def _im2col(x, kh, kw, sh, sw, ph, pw):
    """x: (B, C, H, W) -> (B*Ho*Wo, C*kh*kw); rows ordered (B, Ho, Wo)."""
    B, C, H, W = x.shape
    Ho = (H + 2 * ph - kh) // sh + 1
    Wo = (W + 2 * pw - kw) // sw + 1
    xp = jnp.pad(x, ((0, 0), (0, 0), (ph, ph), (pw, pw)))
    cols = []
    for i in range(kh):
        for j in range(kw):
            cols.append(xp[:, :, i:i + sh * (Ho - 1) + 1:sh,
                              j:j + sw * (Wo - 1) + 1:sw])  # (B, C, Ho, Wo)
    p = jnp.stack(cols, axis=2)          # (B, C, kh*kw, Ho, Wo)
    p = p.transpose(0, 3, 4, 1, 2)       # (B, Ho, Wo, C, kh*kw)
    return p.reshape(B * Ho * Wo, C * kh * kw), Ho, Wo


@functools.partial(jax.jit, static_argnames=("stride", "padding"))
def encoder_block_forward(x, params, *, stride, padding):
    """x: (B, 2*Cin, H, W) float32 -> (B, 2*Cout, Ho, Wo) float32."""
    w_real = params["w_real"].astype(jnp.float32)
    w_imag = params["w_imag"].astype(jnp.float32)
    b_real = params["b_real"].astype(jnp.float32)
    b_imag = params["b_imag"].astype(jnp.float32)
    gamma = params["bn_gamma"].astype(jnp.float32)
    beta = params["bn_beta"].astype(jnp.float32)
    alpha = params["prelu_alpha"].astype(jnp.float32).reshape(1)

    cout, cin, kh, kw = w_real.shape
    B = x.shape[0]
    sh, sw = stride
    ph, pw = padding
    K = cin * kh * kw

    # im2col of the full (real+imag) input: columns are channel-major, so the
    # first K columns are the real-stream patches and the next K the imag ones.
    patches, Ho, Wo = _im2col(x.astype(jnp.float32), kh, kw, sh, sw, ph, pw)
    N, k_cols = patches.shape                              # k_cols == 2*K
    Wp = _round_up(2 * cout, _LANES)                       # stacked output width

    tile_m = _pick_tile_m(N, k_cols, Wp)
    num_tiles = -(-N // tile_m)
    n_cores = 2 if num_tiles >= 2 else 1                   # megacore split (v7x)
    tiles_total = _round_up(num_tiles, n_cores)
    tiles_per_core = tiles_total // n_cores
    Np = tiles_total * tile_m

    patches = jnp.pad(patches, ((0, Np - N), (0, 0))).astype(jnp.bfloat16)

    # Block-structured weight: one matmul emits [out_real | out_imag].
    wrT = w_real.reshape(cout, K).T                        # (K, cout)
    wiT = w_imag.reshape(cout, K).T
    w_stack = jnp.zeros((2 * K, Wp), jnp.float32)
    w_stack = w_stack.at[:K, :cout].set(wrT).at[:K, cout:2 * cout].set(wiT)
    w_stack = w_stack.at[K:, :cout].set(-wiT).at[K:, cout:2 * cout].set(wrT)
    w_stack = w_stack.astype(jnp.bfloat16)

    bias_row = (jnp.zeros((1, Wp), jnp.float32)
                .at[0, :cout].set(b_real - b_imag)
                .at[0, cout:2 * cout].set(b_real + b_imag))

    y_pad, ch_sum, ch_ssq = pl.pallas_call(
        _complex_conv_kernel,
        grid=(n_cores, tiles_per_core),
        in_specs=[
            pl.BlockSpec((tile_m, k_cols), lambda c, i: (c * tiles_per_core + i, 0)),
            pl.BlockSpec((2 * K, Wp), lambda c, i: (0, 0)),
            pl.BlockSpec((1, Wp), lambda c, i: (0, 0)),
        ],
        out_specs=[
            pl.BlockSpec((tile_m, Wp), lambda c, i: (c * tiles_per_core + i, 0)),
            pl.BlockSpec((None, 1, Wp), lambda c, i: (c, 0, 0)),
            pl.BlockSpec((None, 1, Wp), lambda c, i: (c, 0, 0)),
        ],
        out_shape=[
            jax.ShapeDtypeStruct((Np, Wp), jnp.bfloat16),
            jax.ShapeDtypeStruct((n_cores, 1, Wp), jnp.float32),
            jax.ShapeDtypeStruct((n_cores, 1, Wp), jnp.float32),
        ],
        compiler_params=pltpu.CompilerParams(
            dimension_semantics=("parallel", "arbitrary"),
            vmem_limit_bytes=_VMEM_LIMIT,
        ),
    )(patches, w_stack, bias_row)

    # Finalize BatchNorm (training-mode: batch statistics, biased variance).
    # Padded rows hold exactly the bias row -> subtract their contribution.
    nf = jnp.float32(N)
    pad_rows = jnp.float32(Np - N)
    tot_sum = jnp.sum(ch_sum, axis=0) - pad_rows * bias_row            # (1, Wp)
    tot_ssq = jnp.sum(ch_ssq, axis=0) - pad_rows * bias_row * bias_row
    mean = tot_sum / nf
    # TODO(synk): E[x^2]-E[x]^2 can cancel for very large/offset activations;
    #             fine at current tolerances, switch to a shifted pass if tightened.
    var = jnp.maximum(tot_ssq / nf - mean * mean, 0.0)

    gamma_p = jnp.zeros((1, Wp), jnp.float32).at[0, :2 * cout].set(gamma)
    beta_p = jnp.zeros((1, Wp), jnp.float32).at[0, :2 * cout].set(beta)
    inv_std = lax.rsqrt(var + _BN_EPS)
    scale = gamma_p * inv_std
    shift = beta_p - mean * scale

    out_pad = pl.pallas_call(
        _bn_prelu_kernel,
        grid=(tiles_total,),
        in_specs=[
            pl.BlockSpec((tile_m, Wp), lambda i: (i, 0)),
            pl.BlockSpec((1, Wp), lambda i: (0, 0)),
            pl.BlockSpec((1, Wp), lambda i: (0, 0)),
            pl.BlockSpec(memory_space=pltpu.MemorySpace.SMEM),
        ],
        out_specs=pl.BlockSpec((tile_m, Wp), lambda i: (i, 0)),
        out_shape=jax.ShapeDtypeStruct((Np, Wp), jnp.bfloat16),
        input_output_aliases={0: 0},       # reuse the y_pad buffer in place
        compiler_params=pltpu.CompilerParams(
            dimension_semantics=("parallel",),
            vmem_limit_bytes=_VMEM_LIMIT,
        ),
    )(y_pad, scale, shift, alpha)

    # Back to NCHW: columns are already [real channels | imag channels].
    out = out_pad[:N, :2 * cout].astype(jnp.float32)
    return out.reshape(B, Ho, Wo, 2 * cout).transpose(0, 3, 1, 2)


def _reference_forward(x, params, *, stride, padding):
    """Pure-JAX reference matching the PyTorch EncoderBlock forward."""
    wr, wi = params["w_real"], params["w_imag"]
    br, bi = params["b_real"], params["b_imag"]
    gamma, beta = params["bn_gamma"], params["bn_beta"]
    alpha = params["prelu_alpha"]
    ph, pw = padding

    def conv(inp, w, b):
        out = lax.conv_general_dilated(
            inp, w, window_strides=stride, padding=[(ph, ph), (pw, pw)],
            dimension_numbers=("NCHW", "OIHW", "NCHW"),
            precision=lax.Precision.HIGHEST)
        return out + b.reshape(1, -1, 1, 1)

    xr, xi = jnp.split(x, 2, axis=1)
    out_real = conv(xr, wr, br) - conv(xi, wi, bi)
    out_imag = conv(xi, wr, br) + conv(xr, wi, bi)
    y = jnp.concatenate([out_real, out_imag], axis=1)

    mean = y.mean(axis=(0, 2, 3), keepdims=True)
    var = y.var(axis=(0, 2, 3), keepdims=True)
    yn = (y - mean) / jnp.sqrt(var + _BN_EPS)
    yn = yn * gamma.reshape(1, -1, 1, 1) + beta.reshape(1, -1, 1, 1)
    return jnp.where(yn >= 0.0, yn, alpha.reshape(1, 1, 1, 1) * yn)


if __name__ == "__main__":
    def run_case(B, Cin, Cout, H, W, kernel_size, stride, padding):
        key = jax.random.PRNGKey(0)
        ks = jax.random.split(key, 8)
        x = jax.random.normal(ks[0], (B, 2 * Cin, H, W), jnp.float32)
        params = {
            "w_real": 0.2 * jax.random.normal(ks[1], (Cout, Cin) + kernel_size, jnp.float32),
            "w_imag": 0.2 * jax.random.normal(ks[2], (Cout, Cin) + kernel_size, jnp.float32),
            "b_real": 0.1 * jax.random.normal(ks[3], (Cout,), jnp.float32),
            "b_imag": 0.1 * jax.random.normal(ks[4], (Cout,), jnp.float32),
            "bn_gamma": 1.0 + 0.1 * jax.random.normal(ks[5], (2 * Cout,), jnp.float32),
            "bn_beta": 0.1 * jax.random.normal(ks[6], (2 * Cout,), jnp.float32),
            "prelu_alpha": jnp.full((1,), 0.25, jnp.float32),
        }
        out = jax.block_until_ready(
            encoder_block_forward(x, params, stride=stride, padding=padding))
        ref = jax.block_until_ready(
            _reference_forward(x, params, stride=stride, padding=padding))

        kh, kw = kernel_size
        Ho = (H + 2 * padding[0] - kh) // stride[0] + 1
        Wo = (W + 2 * padding[1] - kw) // stride[1] + 1
        assert out.shape == (B, 2 * Cout, Ho, Wo), out.shape

        err = jnp.abs(out - ref)
        max_err = float(jnp.max(err))
        rms_err = float(jnp.sqrt(jnp.mean(err * err)))
        # bf16 patches/weights/intermediate -> allow bf16-scale rounding while
        # keeping a tight statistical check that catches structural bugs.
        assert max_err < 7.5e-2, f"max |pallas - reference| = {max_err}"
        assert rms_err < 1.5e-2, f"rms |pallas - reference| = {rms_err}"

    # Small case (single tile, single core path).
    run_case(B=2, Cin=2, Cout=4, H=16, W=16,
             kernel_size=(3, 3), stride=(2, 2), padding=(1, 1))
    # Larger case exercising the 2-core grid split and padded-row correction.
    run_case(B=2, Cin=2, Cout=4, H=48, W=48,
             kernel_size=(3, 3), stride=(2, 2), padding=(1, 1))

    print("KERNEL_OK")
</pallas_src>

<mosaic_0001>
module attributes {stable_mosaic.version = 11 : i64} {
  func.func @_complex_conv_kernel(%arg0: i32, %arg1: i32, %arg2: memref<128x36xbf16, #tpu.memory_space<vmem>>, %arg3: memref<36x128xbf16, #tpu.memory_space<vmem>>, %arg4: memref<1x128xf32, #tpu.memory_space<vmem>>, %arg5: memref<128x128xbf16, #tpu.memory_space<vmem>>, %arg6: memref<1x1x128xf32, #tpu.memory_space<vmem>>, %arg7: memref<1x1x128xf32, #tpu.memory_space<vmem>>) attributes {dimension_semantics = [#tpu.dimension_semantics<parallel>, #tpu.dimension_semantics<arbitrary>], iteration_bounds = array<i64: 1, 1>, scalar_prefetch = 0 : i64, scratch_operands = 0 : i64, tpu.core_type = #tpu.core_type<tc>, window_params = [{transform_indices = @transform_0, window_bounds = array<i64: 128, 36>}, {pipeline_mode = #tpu.pipeline_mode<synchronous>, transform_indices = @transform_1, window_bounds = array<i64: 36, 128>}, {pipeline_mode = #tpu.pipeline_mode<synchronous>, transform_indices = @transform_2, window_bounds = array<i64: 1, 128>}, {transform_indices = @transform_3, window_bounds = array<i64: 128, 128>}, {transform_indices = @transform_4, window_bounds = array<i64: 1, 1, 128>}, {transform_indices = @transform_5, window_bounds = array<i64: 1, 1, 128>}]} {
    %c0 = arith.constant 0 : index
    %c0_0 = arith.constant 0 : index
    %0 = vector.load %arg2[%c0, %c0_0] : memref<128x36xbf16, #tpu.memory_space<vmem>>, vector<128x36xbf16>
    %c0_1 = arith.constant 0 : index
    %c0_2 = arith.constant 0 : index
    %1 = vector.load %arg3[%c0_1, %c0_2] : memref<36x128xbf16, #tpu.memory_space<vmem>>, vector<36x128xbf16>
    %cst = arith.constant dense<0.000000e+00> : vector<128x128xf32>
    %2 = tpu.matmul %0, %1, %cst {dimension_numbers = #tpu.dot_dimension_numbers<[1], [0], [0], [1], [0, 0, 1, 1], [], []>} : vector<128x36xbf16>, vector<36x128xbf16>, vector<128x128xf32> -> vector<128x128xf32>
    %c0_3 = arith.constant 0 : index
    %c0_4 = arith.constant 0 : index
    %3 = vector.load %arg4[%c0_3, %c0_4] : memref<1x128xf32, #tpu.memory_space<vmem>>, vector<1x128xf32>
    %4 = vector.broadcast %3 : vector<1x128xf32> to vector<128x128xf32>
    %5 = arith.addf %2, %4 : vector<128x128xf32>
    %6 = arith.truncf %5 : vector<128x128xf32> to vector<128x128xbf16>
    %c0_5 = arith.constant 0 : index
    %c0_6 = arith.constant 0 : index
    %7 = vector.load %arg5[%c0_5, %c0_6] : memref<128x128xbf16, #tpu.memory_space<vmem>>, vector<128x128xbf16>
    tpu.vector_store %arg5[%c0_5, %c0_6], %6 {strides = array<i32>} : memref<128x128xbf16, #tpu.memory_space<vmem>>, vector<128x128xbf16>,
    %c0_i32 = arith.constant 0 : i32
    %8 = arith.cmpi eq, %arg1, %c0_i32 : i32
    %9 = arith.extui %8 : i1 to i32
    %c0_i32_7 = arith.constant 0 : i32
    %10 = arith.cmpi ne, %9, %c0_i32_7 : i32
    scf.if %10 {
      %cst_22 = arith.constant 0.000000e+00 : f32
      %28 = vector.broadcast %cst_22 : f32 to vector<1x128xf32>
      %c0_23 = arith.constant 0 : index
      %c0_24 = arith.constant 0 : index
      %c0_25 = arith.constant 0 : index
      %29 = vector.load %arg6[%c0_23, %c0_24, %c0_25] : memref<1x1x128xf32, #tpu.memory_space<vmem>>, vector<1x1x128xf32>
      %30 = vector.shape_cast %29 : vector<1x1x128xf32> to vector<1x128xf32>
      %31 = vector.shape_cast %28 : vector<1x128xf32> to vector<1x1x128xf32>
      tpu.vector_store %arg6[%c0_23, %c0_24, %c0_25], %31 {strides = array<i32>} : memref<1x1x128xf32, #tpu.memory_space<vmem>>, vector<1x1x128xf32>,
      %cst_26 = arith.constant 0.000000e+00 : f32
      %32 = vector.broadcast %cst_26 : f32 to vector<1x128xf32>
      %c0_27 = arith.constant 0 : index
      %c0_28 = arith.constant 0 : index
      %c0_29 = arith.constant 0 : index
      %33 = vector.load %arg7[%c0_27, %c0_28, %c0_29] : memref<1x1x128xf32, #tpu.memory_space<vmem>>, vector<1x1x128xf32>
      %34 = vector.shape_cast %33 : vector<1x1x128xf32> to vector<1x128xf32>
      %35 = vector.shape_cast %32 : vector<1x128xf32> to vector<1x1x128xf32>
      tpu.vector_store %arg7[%c0_27, %c0_28, %c0_29], %35 {strides = array<i32>} : memref<1x1x128xf32, #tpu.memory_space<vmem>>, vector<1x1x128xf32>,
    } else {
    }
    %c0_8 = arith.constant 0 : index
    %c0_9 = arith.constant 0 : index
    %c0_10 = arith.constant 0 : index
    %11 = vector.load %arg6[%c0_8, %c0_9, %c0_10] : memref<1x1x128xf32, #tpu.memory_space<vmem>>, vector<1x1x128xf32>
    %12 = vector.shape_cast %11 : vector<1x1x128xf32> to vector<1x128xf32>
    %cst_11 = arith.constant dense<0.000000e+00> : vector<128xf32>
    %13 = vector.multi_reduction <add>, %5, %cst_11 [0] : vector<128x128xf32> to vector<128xf32>
    %14 = vector.shape_cast %13 : vector<128xf32> to vector<1x128xf32>
    %15 = arith.addf %12, %14 : vector<1x128xf32>
    %c0_12 = arith.constant 0 : index
    %c0_13 = arith.constant 0 : index
    %c0_14 = arith.constant 0 : index
    %16 = vector.load %arg6[%c0_12, %c0_13, %c0_14] : memref<1x1x128xf32, #tpu.memory_space<vmem>>, vector<1x1x128xf32>
    %17 = vector.shape_cast %16 : vector<1x1x128xf32> to vector<1x128xf32>
    %18 = vector.shape_cast %15 : vector<1x128xf32> to vector<1x1x128xf32>
    tpu.vector_store %arg6[%c0_12, %c0_13, %c0_14], %18 {strides = array<i32>} : memref<1x1x128xf32, #tpu.memory_space<vmem>>, vector<1x1x128xf32>,
    %c0_15 = arith.constant 0 : index
    %c0_16 = arith.constant 0 : index
    %c0_17 = arith.constant 0 : index
    %19 = vector.load %arg7[%c0_15, %c0_16, %c0_17] : memref<1x1x128xf32, #tpu.memory_space<vmem>>, vector<1x1x128xf32>
    %20 = vector.shape_cast %19 : vector<1x1x128xf32> to vector<1x128xf32>
    %21 = arith.mulf %5, %5 : vector<128x128xf32>
    %cst_18 = arith.constant dense<0.000000e+00> : vector<128xf32>
    %22 = vector.multi_reduction <add>, %21, %cst_18 [0] : vector<128x128xf32> to vector<128xf32>
    %23 = vector.shape_cast %22 : vector<128xf32> to vector<1x128xf32>
    %24 = arith.addf %20, %23 : vector<1x128xf32>
    %c0_19 = arith.constant 0 : index
    %c0_20 = arith.constant 0 : index
    %c0_21 = arith.constant 0 : index
    %25 = vector.load %arg7[%c0_19, %c0_20, %c0_21] : memref<1x1x128xf32, #tpu.memory_space<vmem>>, vector<1x1x128xf32>
    %26 = vector.shape_cast %25 : vector<1x1x128xf32> to vector<1x128xf32>
    %27 = vector.shape_cast %24 : vector<1x128xf32> to vector<1x1x128xf32>
    tpu.vector_store %arg7[%c0_19, %c0_20, %c0_21], %27 {strides = array<i32>} : memref<1x1x128xf32, #tpu.memory_space<vmem>>, vector<1x1x128xf32>,
    return
  }
  func.func @transform_0(%arg0: i32, %arg1: i32) -> (i32, i32) {
    %c1_i32 = arith.constant 1 : i32
    %0 = arith.muli %arg0, %c1_i32 : i32
    %1 = arith.addi %0, %arg1 : i32
    %c0_i32 = arith.constant 0 : i32
    %c0_i32_0 = arith.constant 0 : i32
    return %1, %c0_i32 : i32, i32
  }
  func.func @transform_1(%arg0: i32, %arg1: i32) -> (i32, i32) {
    %c0_i32 = arith.constant 0 : i32
    %c0_i32_0 = arith.constant 0 : i32
    %c0_i32_1 = arith.constant 0 : i32
    return %c0_i32, %c0_i32_0 : i32, i32
  }
  func.func @transform_2(%arg0: i32, %arg1: i32) -> (i32, i32) {
    %c0_i32 = arith.constant 0 : i32
    %c0_i32_0 = arith.constant 0 : i32
    %c0_i32_1 = arith.constant 0 : i32
    return %c0_i32, %c0_i32_0 : i32, i32
  }
  func.func @transform_3(%arg0: i32, %arg1: i32) -> (i32, i32) {
    %c1_i32 = arith.constant 1 : i32
    %0 = arith.muli %arg0, %c1_i32 : i32
    %1 = arith.addi %0, %arg1 : i32
    %c0_i32 = arith.constant 0 : i32
    %c0_i32_0 = arith.constant 0 : i32
    return %1, %c0_i32 : i32, i32
  }
  func.func @transform_4(%arg0: i32, %arg1: i32) -> (i32, i32, i32) {
    %c0_i32 = arith.constant 0 : i32
    %c0_i32_0 = arith.constant 0 : i32
    %c0_i32_1 = arith.constant 0 : i32
    return %arg0, %c0_i32, %c0_i32_0 : i32, i32, i32
  }
  func.func @transform_5(%arg0: i32, %arg1: i32) -> (i32, i32, i32) {
    %c0_i32 = arith.constant 0 : i32
    %c0_i32_0 = arith.constant 0 : i32
    %c0_i32_1 = arith.constant 0 : i32
    return %arg0, %c0_i32, %c0_i32_0 : i32, i32, i32
  }
}

module attributes {stable_mosaic.version = 11 : i64} {
  func.func @_bn_prelu_kernel(%arg0: i32, %arg1: memref<128x128xbf16, #tpu.memory_space<vmem>>, %arg2: memref<1x128xf32, #tpu.memory_space<vmem>>, %arg3: memref<1x128xf32, #tpu.memory_space<vmem>>, %arg4: memref<1xf32, #tpu.memory_space<smem>>, %arg5: memref<128x128xbf16, #tpu.memory_space<vmem>>) attributes {dimension_semantics = [#tpu.dimension_semantics<parallel>], iteration_bounds = array<i64: 1>, scalar_prefetch = 0 : i64, scratch_operands = 0 : i64, tpu.core_type = #tpu.core_type<tc>, window_params = [{transform_indices = @transform_0, window_bounds = array<i64: 128, 128>}, {pipeline_mode = #tpu.pipeline_mode<synchronous>, transform_indices = @transform_1, window_bounds = array<i64: 1, 128>}, {pipeline_mode = #tpu.pipeline_mode<synchronous>, transform_indices = @transform_2, window_bounds = array<i64: 1, 128>}, {transform_indices = @transform_3, window_bounds = array<i64: 1>}, {transform_indices = @transform_4, window_bounds = array<i64: 128, 128>}]} {
    %c0 = arith.constant 0 : index
    %c0_0 = arith.constant 0 : index
    %0 = vector.load %arg1[%c0, %c0_0] : memref<128x128xbf16, #tpu.memory_space<vmem>>, vector<128x128xbf16>
    %1 = arith.extf %0 : vector<128x128xbf16> to vector<128x128xf32>
    %c0_1 = arith.constant 0 : index
    %c0_2 = arith.constant 0 : index
    %2 = vector.load %arg2[%c0_1, %c0_2] : memref<1x128xf32, #tpu.memory_space<vmem>>, vector<1x128xf32>
    %3 = vector.broadcast %2 : vector<1x128xf32> to vector<128x128xf32>
    %4 = arith.mulf %1, %3 : vector<128x128xf32>
    %c0_3 = arith.constant 0 : index
    %c0_4 = arith.constant 0 : index
    %5 = vector.load %arg3[%c0_3, %c0_4] : memref<1x128xf32, #tpu.memory_space<vmem>>, vector<1x128xf32>
    %6 = vector.broadcast %5 : vector<1x128xf32> to vector<128x128xf32>
    %7 = arith.addf %4, %6 : vector<128x128xf32>
    %c0_5 = arith.constant 0 : index
    %8 = memref.load %arg4[%c0_5] : memref<1xf32, #tpu.memory_space<smem>>
    %cst = arith.constant 0.000000e+00 : f32
    %9 = vector.broadcast %cst : f32 to vector<128x128xf32>
    %10 = arith.cmpf oge, %7, %9 : vector<128x128xf32>
    %11 = vector.broadcast %8 : f32 to vector<128x128xf32>
    %12 = arith.mulf %11, %7 : vector<128x128xf32>
    %13 = arith.select %10, %7, %12 : vector<128x128xi1>, vector<128x128xf32>
    %14 = arith.truncf %13 : vector<128x128xf32> to vector<128x128xbf16>
    %c0_6 = arith.constant 0 : index
    %c0_7 = arith.constant 0 : index
    %15 = vector.load %arg5[%c0_6, %c0_7] : memref<128x128xbf16, #tpu.memory_space<vmem>>, vector<128x128xbf16>
    tpu.vector_store %arg5[%c0_6, %c0_7], %14 {strides = array<i32>} : memref<128x128xbf16, #tpu.memory_space<vmem>>, vector<128x128xbf16>,
    return
  }
  func.func @transform_0(%arg0: i32) -> (i32, i32) {
    %c0_i32 = arith.constant 0 : i32
    %c0_i32_0 = arith.constant 0 : i32
    return %arg0, %c0_i32 : i32, i32
  }
  func.func @transform_1(%arg0: i32) -> (i32, i32) {
    %c0_i32 = arith.constant 0 : i32
    %c0_i32_0 = arith.constant 0 : i32
    %c0_i32_1 = arith.constant 0 : i32
    return %c0_i32, %c0_i32_0 : i32, i32
  }
  func.func @transform_2(%arg0: i32) -> (i32, i32) {
    %c0_i32 = arith.constant 0 : i32
    %c0_i32_0 = arith.constant 0 : i32
    %c0_i32_1 = arith.constant 0 : i32
    return %c0_i32, %c0_i32_0 : i32, i32
  }
  func.func @transform_3(%arg0: i32) -> i32 {
    %c0_i32 = arith.constant 0 : i32
    %c0_i32_0 = arith.constant 0 : i32
    return %c0_i32 : i32
  }
  func.func @transform_4(%arg0: i32) -> (i32, i32) {
    %c0_i32 = arith.constant 0 : i32
    %c0_i32_0 = arith.constant 0 : i32
    return %arg0, %c0_i32 : i32, i32
  }
}

</mosaic_0001>

<bundles_post_ra>
// kernel: encoder_block_forward.3
= control target key start
LH: loop header
LB: loop body
LE: loop exit
PB: predicated region body
PF: predicated region fallthrough
CT: control target
= control target key end

     0   :  { %s487_s0 = inlined_call_operand.vmem [shape: bf16[128,128], index: 0, kind: input, shape index: {}, may-alias: {0,4}]   ;;  %s488_s1 = inlined_call_operand.vmem [shape: f32[1,128], index: 1, kind: input, shape index: {}]   ;;  %s489_s2 = inlined_call_operand.vmem [shape: f32[1,128], index: 2, kind: input, shape index: {}]   ;;  %s490_s3 = inlined_call_operand.<no memory space> [shape: f32[1], index: 3, kind: input, shape index: {}]   ;;  %s491_s4 = inlined_call_operand.vmem [shape: bf16[128,128], index: 4, kind: output, shape index: {}, may-alias: {0,4}]  }
   0x1   :  { %v265_v0 = vld [vmem:[%s487_s0] sm:$0xff]   ;;  %v386_v4 = vstv %s490_s3  ;;  %v336_v5 = vld [vmem:[%s487_s0 + $0x8] sm:$0xff]   ;;  %v337_v6 = vld [vmem:[%s487_s0 + $0x10] sm:$0xff]  }
   0x2   :  { %v381_v1 = vld [vmem:[%s488_s1] ss:$0 sm:$0xff]  ;;  %v266_v2 = vunpack.c.l.bf16 %v265_v0  ;;  %v267_v3 = vunpack.c.h.bf16 %v265_v0  ;;  %v338_v7 = vld [vmem:[%s487_s0 + $0x18] sm:$0xff]   ;;  %v270_v9 = vunpack.c.l.bf16 %v336_v5  ;;  %v271_v10 = vunpack.c.h.bf16 %v336_v5  ;;  %v340_v36 = vld [vmem:[%s487_s0 + $0x28] sm:$0xff]  }
   0x3   :  { %v400_v8 = vld [vmem:[%s489_s2] ss:$0 sm:$0xff]  ;;  %v274_v11 = vunpack.c.l.bf16 %v337_v6  ;;  %v275_v12 = vunpack.c.h.bf16 %v337_v6  ;;  %v278_v15 = vunpack.c.l.bf16 %v338_v7  ;;  %v279_v16 = vunpack.c.h.bf16 %v338_v7 }
   0x4   :  { %v57_v13 = vmul.f32 %v266_v2, %v381_v1  ;;  %v58_v14 = vmul.f32 %v267_v3, %v381_v1  ;;  %v59_v17 = vmul.f32 %v270_v9, %v381_v1  ;;  %v60_v18 = vmul.f32 %v271_v10, %v381_v1  ;;  %v339_v35 = vld [vmem:[%s487_s0 + $0x20] sm:$0xff]  }
   0x5   :  { %v61_v19 = vmul.f32 %v274_v11, %v381_v1  ;;  %v62_v20 = vmul.f32 %v275_v12, %v381_v1  ;;  %v63_v23 = vmul.f32 %v278_v15, %v381_v1  ;;  %v64_v24 = vmul.f32 %v279_v16, %v381_v1 }
   0x6   :  { %v80_v21 = vadd.f32 %v400_v8, %v57_v13  ;;  %v81_v22 = vadd.f32 %v400_v8, %v58_v14  ;;  %v82_v25 = vadd.f32 %v400_v8, %v59_v17  ;;  %v83_v26 = vadd.f32 %v400_v8, %v60_v18 }
   0x7   :  { %v84_v27 = vadd.f32 %v400_v8, %v61_v19  ;;  %v85_v28 = vadd.f32 %v400_v8, %v62_v20  ;;  %v86_v43 = vadd.f32 %v400_v8, %v63_v23  ;;  %v87_v44 = vadd.f32 %v400_v8, %v64_v24 }
   0x8   :  { %vm97_vm0 = vcmp.ge.f32.partialorder %v80_v21, 0.0  ;;  %vm98_vm1 = vcmp.ge.f32.partialorder %v81_v22, 0.0  ;;  %v114_v29 = vmul.f32 %v386_v4, %v80_v21  ;;  %v115_v30 = vmul.f32 %v386_v4, %v81_v22 }
   0x9   :  { %vm99_vm2 = vcmp.ge.f32.partialorder %v82_v25, 0.0  ;;  %vm100_vm3 = vcmp.ge.f32.partialorder %v83_v26, 0.0  ;;  %v116_v31 = vmul.f32 %v386_v4, %v82_v25  ;;  %v117_v32 = vmul.f32 %v386_v4, %v83_v26 }
   0xa   :  { %v130_v33 = vsel %vm97_vm0, %v80_v21, %v114_v29  ;;  %v131_v34 = vsel %vm98_vm1, %v81_v22, %v115_v30  ;;  %vm101_vm4 = vcmp.ge.f32.partialorder %v84_v27, 0.0  ;;  %vm102_vm5 = vcmp.ge.f32.partialorder %v85_v28, 0.0 }
   0xb   :  { %v299_v37 = vpack.c.bf16 %v131_v34, %v130_v33  ;;  %v132_v38 = vsel %vm99_vm2, %v82_v25, %v116_v31  ;;  %v133_v39 = vsel %vm100_vm3, %v83_v26, %v117_v32  ;;  %v118_v40 = vmul.f32 %v386_v4, %v84_v27 }
   0xc   :  { %v304_v41 = vpack.c.bf16 %v133_v39, %v132_v38  ;;  %v119_v42 = vmul.f32 %v386_v4, %v85_v28  ;;  %v282_v46 = vunpack.c.l.bf16 %v339_v35  ;;  %v283_v47 = vunpack.c.h.bf16 %v339_v35 }
   0xd   :  { %300 = vst [vmem:[%s491_s4] sm:$0xff] %v299_v37   ;;  %v134_v45 = vsel %vm101_vm4, %v84_v27, %v118_v40  ;;  %v286_v48 = vunpack.c.l.bf16 %v340_v36  ;;  %vm103_vm6 = vcmp.ge.f32.partialorder %v86_v43, 0.0  ;;  %vm104_vm7 = vcmp.ge.f32.partialorder %v87_v44, 0.0 }
   0xe   :  { %v135_v50 = vsel %vm102_vm5, %v85_v28, %v119_v42  ;;  %v120_v51 = vmul.f32 %v386_v4, %v86_v43  ;;  %v121_v53 = vmul.f32 %v386_v4, %v87_v44  ;;  %v65_v54 = vmul.f32 %v282_v46, %v381_v1 }
   0xf   :  { %v309_v52 = vpack.c.bf16 %v135_v50, %v134_v45  ;;  %v66_v55 = vmul.f32 %v283_v47, %v381_v1  ;;  %v287_v57 = vunpack.c.h.bf16 %v340_v36  ;;  %v67_v58 = vmul.f32 %v286_v48, %v381_v1 }
  0x10   :  { %v136_v56 = vsel %vm103_vm6, %v86_v43, %v120_v51  ;;  %v137_v60 = vsel %vm104_vm7, %v87_v44, %v121_v53  ;;  %v88_v61 = vadd.f32 %v400_v8, %v65_v54 }
  0x11   :  { %v89_v62 = vadd.f32 %v400_v8, %v66_v55  ;;  %v314_v0 = vpack.c.bf16 %v137_v60, %v136_v56  ;;  %v68_v2 = vmul.f32 %v287_v57, %v381_v1  ;;  %v90_v3 = vadd.f32 %v400_v8, %v67_v58 }
  0x12   :  { %vm105_vm8 = vcmp.ge.f32.partialorder %v88_v61, 0.0  ;;  %v122_v7 = vmul.f32 %v386_v4, %v88_v61 }
  0x13   :  { %vm106_vm9 = vcmp.ge.f32.partialorder %v89_v62, 0.0  ;;  %v123_v9 = vmul.f32 %v386_v4, %v89_v62  ;;  %v91_v10 = vadd.f32 %v400_v8, %v68_v2  ;;  %vm107_vm10 = vcmp.ge.f32.partialorder %v90_v3, 0.0 }
  0x14   :  { %v341_v49 = vld [vmem:[%s487_s0 + $0x30] sm:$0xff]   ;;  %v124_v11 = vmul.f32 %v386_v4, %v90_v3  ;;  %v138_v13 = vsel %vm105_vm8, %v88_v61, %v122_v7 }
  0x15   :  { %343 = vst [vmem:[%s491_s4 + $0x8] sm:$0xff] %v304_v41   ;;  %v290_v59 = vunpack.c.l.bf16 %v341_v49  ;;  %344 = vst [vmem:[%s491_s4 + $0x10] sm:$0xff] %v309_v52   ;;  %v291_v63 = vunpack.c.h.bf16 %v341_v49  ;;  %v139_v14 = vsel %vm106_vm9, %v89_v62, %v123_v9  ;;  %vm108_vm11 = vcmp.ge.f32.partialorder %v91_v10, 0.0 }
  0x16   :  { %v319_v17 = vpack.c.bf16 %v139_v14, %v138_v13  ;;  %v125_v18 = vmul.f32 %v386_v4, %v91_v10  ;;  %v140_v19 = vsel %vm107_vm10, %v90_v3, %v124_v11 }
  0x17   :  { %v69_v5 = vmul.f32 %v290_v59, %v381_v1  ;;  %v70_v12 = vmul.f32 %v291_v63, %v381_v1 }
  0x18   :  { %v141_v23 = vsel %vm108_vm11, %v91_v10, %v125_v18 }
  0x19   :  { %v92_v15 = vadd.f32 %v400_v8, %v69_v5  ;;  %v93_v20 = vadd.f32 %v400_v8, %v70_v12  ;;  %v324_v25 = vpack.c.bf16 %v141_v23, %v140_v19 }
  0x1b   :  { %vm109_vm12 = vcmp.ge.f32.partialorder %v92_v15, 0.0  ;;  %v126_v21 = vmul.f32 %v386_v4, %v92_v15  ;;  %vm110_vm13 = vcmp.ge.f32.partialorder %v93_v20, 0.0  ;;  %v127_v26 = vmul.f32 %v386_v4, %v93_v20 }
  0x1c   :  { %v342_v6 = vld [vmem:[%s487_s0 + $0x38] sm:$0xff]  }
  0x1d   :  { %345 = vst [vmem:[%s491_s4 + $0x18] sm:$0xff] %v314_v0   ;;  %v294_v16 = vunpack.c.l.bf16 %v342_v6  ;;  %v295_v22 = vunpack.c.h.bf16 %v342_v6  ;;  %346 = vst [vmem:[%s491_s4 + $0x20] sm:$0xff] %v319_v17   ;;  %v142_v27 = vsel %vm109_vm12, %v92_v15, %v126_v21  ;;  %v143_v30 = vsel %vm110_vm13, %v93_v20, %v127_v26 }
  0x1e   :  { %347 = vst [vmem:[%s491_s4 + $0x28] sm:$0xff] %v324_v25   ;;  %v329_v31 = vpack.c.bf16 %v143_v30, %v142_v27 }
  0x1f   :  { %v71_v24 = vmul.f32 %v294_v16, %v381_v1  ;;  %v72_v28 = vmul.f32 %v295_v22, %v381_v1 }
  0x20   :  { %348 = vst [vmem:[%s491_s4 + $0x30] sm:$0xff] %v329_v31  }
  0x21   :  { %v94_v29 = vadd.f32 %v400_v8, %v71_v24  ;;  %v95_v32 = vadd.f32 %v400_v8, %v72_v28 }
  0x23   :  { %vm111_vm14 = vcmp.ge.f32.partialorder %v94_v29, 0.0  ;;  %v128_v33 = vmul.f32 %v386_v4, %v94_v29  ;;  %vm112_vm15 = vcmp.ge.f32.partialorder %v95_v32, 0.0  ;;  %v129_v1 = vmul.f32 %v386_v4, %v95_v32 }
  0x25   :  { %v144_v34 = vsel %vm111_vm14, %v94_v29, %v128_v33  ;;  %v145_v35 = vsel %vm112_vm15, %v95_v32, %v129_v1 }
  0x26   :  { %v334_v36 = vpack.c.bf16 %v145_v35, %v144_v34 }
  0x28   :  { %349 = vst [vmem:[%s491_s4 + $0x38] sm:$0xff] %v334_v36  }

// kernel: encoder_block_forward.2
= control target key start
LH: loop header
LB: loop body
LE: loop exit
PB: predicated region body
PF: predicated region fallthrough
CT: control target
= control target key end

     0   :  { %vm162_vm0 = vcmask 1041408   ;;  %vm137_vm1 = vcmask 293888   ;;  %v605_v12 = vmov 0.0   ;;  %s734_s1 = inlined_call_operand.vmem [shape: bf16[36,128], index: 1, kind: input, shape index: {}]   ;;  %s735_s0 = inlined_call_operand.vmem [shape: bf16[128,36], index: 0, kind: input, shape index: {}]   ;;  %s736_s4 = inlined_call_operand.vmem [shape: f32[1,1,128], index: 4, kind: output, shape index: {1}]   ;;  %s737_s5 = inlined_call_operand.vmem [shape: f32[1,1,128], index: 5, kind: output, shape index: {2}]   ;;  %s738_s2 = inlined_call_operand.vmem [shape: f32[1,128], index: 2, kind: input, shape index: {}]   ;;  %s739_s3 = inlined_call_operand.vmem [shape: bf16[128,128], index: 3, kind: output, shape index: {0}]  }
   0x1   :  { %v594_v0 = vld [vmem:[%s734_s1 + $0x10] ss:$0 sps:$4 sm:$0x33]   ;;  %v595_v1 = vld [vmem:[%s734_s1 + $0x8] sm:$0xff]   ;;  %v597_v3 = vld [vmem:[%s735_s0] sm:$0xff]   ;;  %347 = vst [vmem:[%s736_s4] sm:$0x1] %v605_v12 }
   0x2   :  { %591 = vmatprep.subr.msk.bf16.mxu0 %vm162_vm0, %v594_v0  ;;  %v164_v2 = vsel %vm162_vm0, %v594_v0, 0  ;;  %592 = vmatprep.subr.msk.bf16.mxu1 %vm162_vm0, %v594_v0  ;;  %v596_v4 = vld [vmem:[%s734_s1] sm:$0xff]   ;;  %v598_v6 = vld [vmem:[%s735_s0 + $0x8] sm:$0xff]   ;;  %v599_v8 = vld [vmem:[%s735_s0 + $0x10] sm:$0xff]   ;;  %348 = vst [vmem:[%s737_s5] sm:$0x1] %v605_v12 }
   0x3   :  { %564 = vmatpush3.bf16.msra.mxu0 %v164_v2  ;;  %588 = vmatpush3.bf16.msra.mxu1 %v164_v2  ;;  %v601_v5 = vld [vmem:[%s735_s0 + $0x20] sm:$0xff]   ;;  %v602_v7 = vld [vmem:[%s735_s0 + $0x28] sm:$0xff]   ;;  %v603_v9 = vld [vmem:[%s735_s0 + $0x30] sm:$0xff]  }
   0x4   :  { %565 = vmatprep.subr.bf16.mxu0 %v595_v1  ;;  %586 = vmatprep.subr.bf16.mxu1 %v595_v1  ;;  %v600_v10 = vld [vmem:[%s735_s0 + $0x18] sm:$0xff]   ;;  %v453_v15 = vld [vmem:[%s738_s2] ss:$0 sm:$0xff] }
   0x5   :  { %569 = vmatprep.mubr.msk.bf16.mxu0 %vm137_vm1, %v597_v3  ;;  %577 = vmatprep.mubr.msk.bf16.mxu1 %vm137_vm1, %v601_v5  ;;  %v604_v11 = vld [vmem:[%s735_s0 + $0x38] sm:$0xff]  }
   0x7   :  { %566 = vmatpush3.bf16.msra.mxu0 %v595_v1  ;;  %589 = vmatpush3.bf16.msra.mxu1 %v595_v1 }
   0x8   :  { %567 = vmatprep.subr.bf16.mxu0 %v596_v4  ;;  %587 = vmatprep.subr.bf16.mxu1 %v596_v4 }
   0xb   :  { %568 = vmatpush3.bf16.msra.mxu0 %v596_v4  ;;  %590 = vmatpush3.bf16.msra.mxu1 %v596_v4 }
   0xe   :  { %570 = vmatmul.mubr.msk.bf16.vlgmr.msra.gmra.mxu0 %vm137_vm1, %v598_v6  ;;  %578 = vmatmul.mubr.msk.bf16.vlgmr.msra.gmra.mxu1 %vm137_vm1, %v602_v7 }
   0xf   :  { %573 = vmatprep.mubr.msk.bf16.mxu0 %vm137_vm1, %v599_v8  ;;  %581 = vmatprep.mubr.msk.bf16.mxu1 %vm137_vm1, %v603_v9 }
  0x16   :  { %574 = vmatmul.mubr.msk.bf16.gmra.mxu0 %vm137_vm1, %v600_v10  ;;  %582 = vmatmul.mubr.msk.bf16.gmra.mxu1 %vm137_vm1, %v604_v11 }
  0xce   :  { %v571_v13 = vpop.f32.mrf.mxu0  ;;  %v579_v14 = vpop.f32.mrf.mxu1 }
  0xcf   :  { %v686_v18 = vadd.f32 %v579_v14, %v453_v15  ;;  %v209_v21 = vadd.f32 %v571_v13, %v453_v15 }
  0xd0   :  { %v200_v16 = vpop.f32.mrf.mxu0  ;;  %v232_v17 = vpop.f32.mrf.mxu1 }
  0xd1   :  { %v201_v22 = vadd.f32 %v453_v15, %v200_v16  ;;  %v233_v26 = vadd.f32 %v453_v15, %v232_v17  ;;  %v376_v41 = vmul.f32 %v209_v21, %v209_v21  ;;  %v384_v17 = vmul.f32 %v686_v18, %v686_v18 }
  0xd2   :  { %v572_v19 = vpop.f32.mrf.mxu0  ;;  %v580_v20 = vpop.f32.mrf.mxu1 }
  0xd3   :  { %v212_v23 = vadd.f32 %v572_v19, %v453_v15  ;;  %v688_v24 = vadd.f32 %v580_v20, %v453_v15  ;;  %v374_v34 = vmul.f32 %v201_v22, %v201_v22  ;;  %v382_v11 = vmul.f32 %v233_v26, %v233_v26 }
  0xd4   :  { %v203_v25 = vpop.f32.mrf.mxu0  ;;  %v235_v27 = vpop.f32.mrf.mxu1 }
  0xd5   :  { %v513_v28 = vpack.c.bf16 %v212_v23, %v209_v21  ;;  %v204_v29 = vadd.f32 %v453_v15, %v203_v25  ;;  %v533_v30 = vpack.c.bf16 %v688_v24, %v686_v18  ;;  %v236_v32 = vadd.f32 %v453_v15, %v235_v27 }
  0xd6   :  { %v575_v31 = vpop.f32.mrf.mxu0  ;;  %v583_v33 = vpop.f32.mrf.mxu1  ;;  %v377_v45 = vmul.f32 %v212_v23, %v212_v23 }
  0xd7   :  { %545 = vst [vmem:[%s739_s3 + $0x8] sm:$0xff] %v513_v28   ;;  %v508_v35 = vpack.c.bf16 %v204_v29, %v201_v22  ;;  %v350_v36 = vadd.f32 %v204_v29, %v201_v22  ;;  %v375_v37 = vmul.f32 %v204_v29, %v204_v29  ;;  %549 = vst [vmem:[%s739_s3 + $0x28] sm:$0xff] %v533_v30  }
  0xd8   :  { %v216_v38 = vpop.f32.mrf.mxu0  ;;  %v528_v39 = vpack.c.bf16 %v236_v32, %v233_v26  ;;  %v248_v40 = vpop.f32.mrf.mxu1  ;;  %v257_v47 = vadd.f32 %v583_v33, %v453_v15  ;;  %v225_v50 = vadd.f32 %v575_v31, %v453_v15 }
  0xd9   :  { %509 = vst [vmem:[%s739_s3] sm:$0xff] %v508_v35   ;;  %v351_v42 = vadd.f32 %v350_v36, %v209_v21  ;;  %v390_v43 = vadd.f32 %v375_v37, %v374_v34  ;;  %v217_v44 = vadd.f32 %v453_v15, %v216_v38  ;;  %v249_v54 = vadd.f32 %v453_v15, %v248_v40 }
  0xda   :  { %v576_v46 = vpop.f32.mrf.mxu0  ;;  %548 = vst [vmem:[%s739_s3 + $0x20] sm:$0xff] %v528_v39   ;;  %v584_v48 = vpop.f32.mrf.mxu1  ;;  %v380_v5 = vmul.f32 %v225_v50, %v225_v50  ;;  %v385_v21 = vmul.f32 %v688_v24, %v688_v24  ;;  %v388_v31 = vmul.f32 %v257_v47, %v257_v47 }
  0xdb   :  { %v391_v49 = vadd.f32 %v390_v43, %v376_v41  ;;  %v352_v51 = vadd.f32 %v351_v42, %v212_v23  ;;  %v228_v52 = vadd.f32 %v576_v46, %v453_v15  ;;  %v260_v55 = vadd.f32 %v584_v48, %v453_v15  ;;  %v373_v48 = vld [vmem:[%s737_s5] sm:$0x1] }
  0xdc   :  { %v219_v53 = vpop.f32.mrf.mxu0  ;;  %v251_v56 = vpop.f32.mrf.mxu1  ;;  %v378_v58 = vmul.f32 %v217_v44, %v217_v44  ;;  %v386_v27 = vmul.f32 %v249_v54, %v249_v54 }
  0xdd   :  { %v353_v57 = vadd.f32 %v352_v51, %v217_v44  ;;  %v392_v59 = vadd.f32 %v391_v49, %v377_v45  ;;  %v523_v60 = vpack.c.bf16 %v228_v52, %v225_v50  ;;  %v220_v61 = vadd.f32 %v453_v15, %v219_v53  ;;  %v349_v45 = vld [vmem:[%s736_s4] sm:$0x1] }
  0xde   :  { %v543_v62 = vpack.c.bf16 %v260_v55, %v257_v47  ;;  %v252_v63 = vadd.f32 %v453_v15, %v251_v56  ;;  %v381_v8 = vmul.f32 %v228_v52, %v228_v52  ;;  %v383_v15 = vmul.f32 %v236_v32, %v236_v32 }
  0xdf   :  { %v393_v0 = vadd.f32 %v392_v59, %v378_v58  ;;  %547 = vst [vmem:[%s739_s3 + $0x18] sm:$0xff] %v523_v60   ;;  %v518_v1 = vpack.c.bf16 %v220_v61, %v217_v44  ;;  %v354_v2 = vadd.f32 %v353_v57, %v220_v61  ;;  %v379_v3 = vmul.f32 %v220_v61, %v220_v61 }
  0xe0   :  { %551 = vst [vmem:[%s739_s3 + $0x38] sm:$0xff] %v543_v62   ;;  %v538_v4 = vpack.c.bf16 %v252_v63, %v249_v54  ;;  %v387_v30 = vmul.f32 %v252_v63, %v252_v63  ;;  %v389_v34 = vmul.f32 %v260_v55, %v260_v55 }
  0xe1   :  { %546 = vst [vmem:[%s739_s3 + $0x10] sm:$0xff] %v518_v1   ;;  %v355_v6 = vadd.f32 %v354_v2, %v225_v50  ;;  %v394_v7 = vadd.f32 %v393_v0, %v379_v3 }
  0xe2   :  { %550 = vst [vmem:[%s739_s3 + $0x30] sm:$0xff] %v538_v4  }
  0xe3   :  { %v395_v9 = vadd.f32 %v394_v7, %v380_v5  ;;  %v356_v10 = vadd.f32 %v355_v6, %v228_v52 }
  0xe5   :  { %v357_v12 = vadd.f32 %v356_v10, %v233_v26  ;;  %v396_v13 = vadd.f32 %v395_v9, %v381_v8 }
  0xe7   :  { %v358_v14 = vadd.f32 %v357_v12, %v236_v32  ;;  %v397_v16 = vadd.f32 %v396_v13, %v382_v11 }
  0xe9   :  { %v359_v19 = vadd.f32 %v358_v14, %v686_v18  ;;  %v398_v20 = vadd.f32 %v397_v16, %v383_v15 }
  0xeb   :  { %v399_v22 = vadd.f32 %v398_v20, %v384_v17  ;;  %v360_v23 = vadd.f32 %v359_v19, %v688_v24 }
  0xed   :  { %v361_v25 = vadd.f32 %v360_v23, %v249_v54  ;;  %v400_v28 = vadd.f32 %v399_v22, %v385_v21 }
  0xef   :  { %v401_v26 = vadd.f32 %v400_v28, %v386_v27  ;;  %v362_v29 = vadd.f32 %v361_v25, %v252_v63 }
  0xf1   :  { %v363_v32 = vadd.f32 %v362_v29, %v257_v47  ;;  %v402_v33 = vadd.f32 %v401_v26, %v387_v30 }
  0xf3   :  { %v364_v35 = vadd.f32 %v363_v32, %v260_v55  ;;  %v403_v36 = vadd.f32 %v402_v33, %v388_v31 }
  0xf5   :  { %v365_v18 = vrot.slane %v364_v35, 4  ;;  %v404_v37 = vadd.f32 %v403_v36, %v389_v34 }
  0xf7   :  { %v366_v38 = vadd.f32 %v365_v18, %v364_v35  ;;  %v405_v39 = vrot.slane %v404_v37, 4 }
  0xf9   :  { %v367_v40 = vrot.slane %v366_v38, 2  ;;  %v406_v41 = vadd.f32 %v405_v39, %v404_v37 }
  0xfb   :  { %v368_v42 = vadd.f32 %v367_v40, %v366_v38  ;;  %v407_v24 = vrot.slane %v406_v41, 2 }
  0xfd   :  { %v369_v43 = vrot.slane %v368_v42, 1  ;;  %v408_v44 = vadd.f32 %v407_v24, %v406_v41 }
  0xff   :  { %v370_v46 = vadd.f32 %v369_v43, %v368_v42  ;;  %v409_v47 = vrot.slane %v408_v44, 1 }
 0x101   :  { %v371_v49 = vadd.f32 %v370_v46, %v349_v45  ;;  %v410_v50 = vadd.f32 %v409_v47, %v408_v44 }
 0x103   :  { %372 = vst [vmem:[%s736_s4] sm:$0x1] %v371_v49  ;;  %v411_v51 = vadd.f32 %v410_v50, %v373_v48 }
 0x105   :  { %412 = vst [vmem:[%s737_s5] sm:$0x1] %v411_v51 }

</bundles_post_ra>
